<compile_context>
chip_gen: v7x
topology: tpu7x:2x2x1
jax: 0.10.0
libtpu: 0.0.40
codegen_flags: <defaults>
</compile_context>

<pallas_src>
import functools

import jax
import jax.numpy as jnp
import numpy as np
from jax.experimental import pallas as pl
from jax.experimental.pallas import tpu as pltpu


# ----------------------------------------------------------------------------
# Pallas kernel
# ----------------------------------------------------------------------------
def _dalea_kernel(n_layers, x_ref, xm_ref, xis_ref, ym_ref, ys_ref, *rest):
    """Fused forward pass for one (sample, batch-tile) grid step.

    rest layout (all refs), per layer i = 0..n_layers:
      if i > 0:  scale_postact (1, dim_in)  [= exp(log_scale_postact)],
                 noise_postact (1, tile_b, dim_in)
      always:    w_t (dim_in, dim_out), b (1, dim_out),
                 scale_preact (1, dim_out) [= exp(log_scale_preact)],
                 noise_preact (1, tile_b, dim_out)
    Last element of rest is the output ref (1, tile_b, n_targets).
    """
    out_ref = rest[-1]
    lyr = rest[:-1]

    # input normalization: (x - x_mean) * (1 / x_std)   (reciprocal hoisted)
    h = (x_ref[...] - xm_ref[...]) * xis_ref[...]

    idx = 0
    for i in range(n_layers + 1):
        if i > 0:
            scale_post = lyr[idx][...]       # (1, dim_in)
            noise_post = lyr[idx + 1][0]     # (tile_b, dim_in)
            idx += 2
            h = h + noise_post * scale_post

        w_t = lyr[idx][...]                  # (dim_in, dim_out)
        b = lyr[idx + 1][...]                # (1, dim_out)
        scale_pre = lyr[idx + 2][...]        # (1, dim_out)
        noise_pre = lyr[idx + 3][0]          # (tile_b, dim_out)
        idx += 4

        # MXU matmul (operands in w_t's dtype, f32 accumulation), bias fused
        # into the noise term so there is a single broadcast add.
        h = jnp.dot(h.astype(w_t.dtype), w_t,
                    preferred_element_type=jnp.float32)
        h = h + (noise_pre * scale_pre + b)
        if i < n_layers:
            h = jnp.tanh(h)

    # output de-normalization: y * y_std + y_mean
    # (n_targets is small -> masked lane stores; acceptable at this size)
    out_ref[0] = (h * ys_ref[...] + ym_ref[...]).astype(out_ref.dtype)


def _choose_tile_b(batch):
    """Batch-row tile: <= 512 rows, multiple of 8 when possible, divides batch."""
    if batch <= 512:
        return batch
    for t in range(512, 7, -8):
        if batch % t == 0:
            return t
    return batch  # fall back to full batch (no batch tiling)


# ----------------------------------------------------------------------------
# Wrapper
# ----------------------------------------------------------------------------
def dalea_unistate_forward(x, params, noises, n_samples,
                           matmul_dtype=jnp.float32):
    """x: (batch, n_features) f32; noises[i]: dict of (n_samples,batch,dim).

    Returns (n_samples, batch, n_targets) f32.
    """
    batch, n_features = x.shape
    n_layers = params["n_layers"]
    n_targets = params["y_mean"].shape[-1]

    tile_b = _choose_tile_b(batch)
    n_btiles = batch // tile_b

    # Hoist EUP work (exp, reciprocal) out of the kernel.
    inv_x_std = (1.0 / params["x_std"]).reshape(1, -1)

    def const_spec(shape):
        return pl.BlockSpec(shape, lambda s, b: (0, 0))

    kernel_inputs = [
        x,
        params["x_mean"].reshape(1, -1),
        inv_x_std,
        params["y_mean"].reshape(1, -1),
        params["y_std"].reshape(1, -1),
    ]
    in_specs = [
        # same x block for every sample -> no jnp.tile / HBM blowup
        pl.BlockSpec((tile_b, n_features), lambda s, b: (b, 0)),
        const_spec((1, n_features)),
        const_spec((1, n_features)),
        const_spec((1, n_targets)),
        const_spec((1, n_targets)),
    ]

    for i in range(n_layers + 1):
        layer = params["layers"][i]
        noise = noises[i]
        dim_out, dim_in = layer["w"].shape
        if i > 0:
            kernel_inputs.append(
                jnp.exp(layer["log_scale_postact"]).reshape(1, -1))
            in_specs.append(const_spec((1, dim_in)))
            kernel_inputs.append(noise["postact"])  # (n_samples, batch, dim_in)
            in_specs.append(
                pl.BlockSpec((1, tile_b, dim_in), lambda s, b: (s, b, 0)))
        # pre-transpose weight -> (dim_in, dim_out); optional bf16 operands
        kernel_inputs.append(layer["w"].T.astype(matmul_dtype))
        in_specs.append(pl.BlockSpec((dim_in, dim_out), lambda s, b: (0, 0)))
        kernel_inputs.append(layer["b"].reshape(1, -1))
        in_specs.append(const_spec((1, dim_out)))
        kernel_inputs.append(
            jnp.exp(layer["log_scale_preact"]).reshape(1, -1))
        in_specs.append(const_spec((1, dim_out)))
        kernel_inputs.append(noise["preact"])       # (n_samples, batch, dim_out)
        in_specs.append(
            pl.BlockSpec((1, tile_b, dim_out), lambda s, b: (s, b, 0)))

    out = pl.pallas_call(
        functools.partial(_dalea_kernel, n_layers),
        out_shape=jax.ShapeDtypeStruct((n_samples, batch, n_targets),
                                       jnp.float32),
        grid=(n_samples, n_btiles),
        in_specs=in_specs,
        out_specs=pl.BlockSpec((1, tile_b, n_targets),
                               lambda s, b: (s, b, 0)),
        compiler_params=pltpu.CompilerParams(
            # both grid axes are independent -> megacore sharding on v7x
            dimension_semantics=("parallel", "parallel"),
            # stay well under v7x's 64 MiB physical VMEM
            vmem_limit_bytes=48 * 1024 * 1024,
        ),
    )(*kernel_inputs)
    return out


# ----------------------------------------------------------------------------
# Pure-JAX reference (for the correctness check)
# ----------------------------------------------------------------------------
def dalea_unistate_reference(x, params, noises, n_samples):
    n_layers = params["n_layers"]
    h = (x - params["x_mean"]) / params["x_std"]
    h = jnp.tile(h[None, :, :], (n_samples, 1, 1))  # (S, B, F)
    for i in range(n_layers + 1):
        layer = params["layers"][i]
        noise = noises[i]
        if i > 0:
            h = h + noise["postact"] * jnp.exp(layer["log_scale_postact"])
        h = h @ layer["w"].T + layer["b"]
        h = h + noise["preact"] * jnp.exp(layer["log_scale_preact"])
        if i < n_layers:
            h = jnp.tanh(h)
    return h * params["y_std"] + params["y_mean"]


# ----------------------------------------------------------------------------
# Deterministic parameter / input construction
# ----------------------------------------------------------------------------
def make_params(key, n_features, n_targets, n_layers, n_nodes):
    layers = []
    for i in range(n_layers + 1):
        dim_inp = n_features if i == 0 else n_nodes
        dim_out = n_targets if i == n_layers else n_nodes
        key, kw, kb, kpre, kpost = jax.random.split(key, 5)
        bound = 1.0 / np.sqrt(dim_inp)
        layer = {
            "w": jax.random.uniform(kw, (dim_out, dim_inp), jnp.float32,
                                    -bound, bound),
            "b": jax.random.uniform(kb, (dim_out,), jnp.float32, -bound, bound),
            "log_scale_preact": 0.1 * jax.random.normal(kpre, (dim_out,),
                                                        jnp.float32) - 2.0,
        }
        if i > 0:
            layer["log_scale_postact"] = (
                0.1 * jax.random.normal(kpost, (dim_inp,), jnp.float32) - 2.0)
        layers.append(layer)
    return {
        "n_layers": n_layers,
        "layers": layers,
        "x_mean": jnp.zeros((n_features,), jnp.float32),
        "x_std": jnp.ones((n_features,), jnp.float32),
        "y_mean": jnp.zeros((n_targets,), jnp.float32),
        "y_std": jnp.ones((n_targets,), jnp.float32),
    }


def make_noises(key, n_samples, batch, n_features, n_targets, n_layers,
                n_nodes):
    noises = []
    for i in range(n_layers + 1):
        dim_inp = n_features if i == 0 else n_nodes
        dim_out = n_targets if i == n_layers else n_nodes
        key, kpost, kpre = jax.random.split(key, 3)
        entry = {"preact": jax.random.normal(kpre, (n_samples, batch, dim_out),
                                             jnp.float32)}
        if i > 0:
            entry["postact"] = jax.random.normal(
                kpost, (n_samples, batch, dim_inp), jnp.float32)
        noises.append(entry)
    return noises


# ----------------------------------------------------------------------------
if __name__ == "__main__":
    # small shapes consistent with the module's forward
    n_features, n_targets, n_layers, n_nodes = 16, 8, 2, 32
    batch, n_samples = 8, 4

    root = jax.random.PRNGKey(0)
    kx, kp, kn = jax.random.split(root, 3)

    x = jax.random.normal(kx, (batch, n_features), jnp.float32)
    params = make_params(kp, n_features, n_targets, n_layers, n_nodes)
    noises = make_noises(kn, n_samples, batch, n_features, n_targets,
                         n_layers, n_nodes)

    out = dalea_unistate_forward(x, params, noises, n_samples)
    out = jax.block_until_ready(out)

    ref = dalea_unistate_reference(x, params, noises, n_samples)
    np.testing.assert_allclose(np.asarray(out), np.asarray(ref),
                               rtol=1e-5, atol=1e-5)

    print("KERNEL_OK")
</pallas_src>

<mosaic_0001>
module attributes {stable_mosaic.version = 11 : i64} {
  func.func @_dalea_kernel(%arg0: i32, %arg1: i32, %arg2: memref<8x16xf32, #tpu.memory_space<vmem>>, %arg3: memref<1x16xf32, #tpu.memory_space<vmem>>, %arg4: memref<1x16xf32, #tpu.memory_space<vmem>>, %arg5: memref<1x8xf32, #tpu.memory_space<vmem>>, %arg6: memref<1x8xf32, #tpu.memory_space<vmem>>, %arg7: memref<16x32xf32, #tpu.memory_space<vmem>>, %arg8: memref<1x32xf32, #tpu.memory_space<vmem>>, %arg9: memref<1x32xf32, #tpu.memory_space<vmem>>, %arg10: memref<1x8x32xf32, #tpu.memory_space<vmem>>, %arg11: memref<1x32xf32, #tpu.memory_space<vmem>>, %arg12: memref<1x8x32xf32, #tpu.memory_space<vmem>>, %arg13: memref<32x32xf32, #tpu.memory_space<vmem>>, %arg14: memref<1x32xf32, #tpu.memory_space<vmem>>, %arg15: memref<1x32xf32, #tpu.memory_space<vmem>>, %arg16: memref<1x8x32xf32, #tpu.memory_space<vmem>>, %arg17: memref<1x32xf32, #tpu.memory_space<vmem>>, %arg18: memref<1x8x32xf32, #tpu.memory_space<vmem>>, %arg19: memref<32x8xf32, #tpu.memory_space<vmem>>, %arg20: memref<1x8xf32, #tpu.memory_space<vmem>>, %arg21: memref<1x8xf32, #tpu.memory_space<vmem>>, %arg22: memref<1x8x8xf32, #tpu.memory_space<vmem>>, %arg23: memref<1x8x8xf32, #tpu.memory_space<vmem>>) attributes {dimension_semantics = [#tpu.dimension_semantics<parallel>, #tpu.dimension_semantics<parallel>], iteration_bounds = array<i64: 4, 1>, scalar_prefetch = 0 : i64, scratch_operands = 0 : i64, tpu.core_type = #tpu.core_type<tc>, window_params = [{transform_indices = @transform_0, window_bounds = array<i64: 8, 16>}, {pipeline_mode = #tpu.pipeline_mode<synchronous>, transform_indices = @transform_1, window_bounds = array<i64: 1, 16>}, {pipeline_mode = #tpu.pipeline_mode<synchronous>, transform_indices = @transform_2, window_bounds = array<i64: 1, 16>}, {pipeline_mode = #tpu.pipeline_mode<synchronous>, transform_indices = @transform_3, window_bounds = array<i64: 1, 8>}, {pipeline_mode = #tpu.pipeline_mode<synchronous>, transform_indices = @transform_4, window_bounds = array<i64: 1, 8>}, {pipeline_mode = #tpu.pipeline_mode<synchronous>, transform_indices = @transform_5, window_bounds = array<i64: 16, 32>}, {pipeline_mode = #tpu.pipeline_mode<synchronous>, transform_indices = @transform_6, window_bounds = array<i64: 1, 32>}, {pipeline_mode = #tpu.pipeline_mode<synchronous>, transform_indices = @transform_7, window_bounds = array<i64: 1, 32>}, {transform_indices = @transform_8, window_bounds = array<i64: 1, 8, 32>}, {pipeline_mode = #tpu.pipeline_mode<synchronous>, transform_indices = @transform_9, window_bounds = array<i64: 1, 32>}, {transform_indices = @transform_10, window_bounds = array<i64: 1, 8, 32>}, {pipeline_mode = #tpu.pipeline_mode<synchronous>, transform_indices = @transform_11, window_bounds = array<i64: 32, 32>}, {pipeline_mode = #tpu.pipeline_mode<synchronous>, transform_indices = @transform_12, window_bounds = array<i64: 1, 32>}, {pipeline_mode = #tpu.pipeline_mode<synchronous>, transform_indices = @transform_13, window_bounds = array<i64: 1, 32>}, {transform_indices = @transform_14, window_bounds = array<i64: 1, 8, 32>}, {pipeline_mode = #tpu.pipeline_mode<synchronous>, transform_indices = @transform_15, window_bounds = array<i64: 1, 32>}, {transform_indices = @transform_16, window_bounds = array<i64: 1, 8, 32>}, {pipeline_mode = #tpu.pipeline_mode<synchronous>, transform_indices = @transform_17, window_bounds = array<i64: 32, 8>}, {pipeline_mode = #tpu.pipeline_mode<synchronous>, transform_indices = @transform_18, window_bounds = array<i64: 1, 8>}, {pipeline_mode = #tpu.pipeline_mode<synchronous>, transform_indices = @transform_19, window_bounds = array<i64: 1, 8>}, {transform_indices = @transform_20, window_bounds = array<i64: 1, 8, 8>}, {transform_indices = @transform_21, window_bounds = array<i64: 1, 8, 8>}]} {
    %c0 = arith.constant 0 : index
    %c0_0 = arith.constant 0 : index
    %0 = vector.load %arg2[%c0, %c0_0] : memref<8x16xf32, #tpu.memory_space<vmem>>, vector<8x16xf32>
    %c0_1 = arith.constant 0 : index
    %c0_2 = arith.constant 0 : index
    %1 = vector.load %arg3[%c0_1, %c0_2] : memref<1x16xf32, #tpu.memory_space<vmem>>, vector<1x16xf32>
    %2 = vector.broadcast %1 : vector<1x16xf32> to vector<8x16xf32>
    %3 = arith.subf %0, %2 : vector<8x16xf32>
    %c0_3 = arith.constant 0 : index
    %c0_4 = arith.constant 0 : index
    %4 = vector.load %arg4[%c0_3, %c0_4] : memref<1x16xf32, #tpu.memory_space<vmem>>, vector<1x16xf32>
    %5 = vector.broadcast %4 : vector<1x16xf32> to vector<8x16xf32>
    %6 = arith.mulf %3, %5 : vector<8x16xf32>
    %c0_5 = arith.constant 0 : index
    %c0_6 = arith.constant 0 : index
    %7 = vector.load %arg7[%c0_5, %c0_6] : memref<16x32xf32, #tpu.memory_space<vmem>>, vector<16x32xf32>
    %c0_7 = arith.constant 0 : index
    %c0_8 = arith.constant 0 : index
    %8 = vector.load %arg8[%c0_7, %c0_8] : memref<1x32xf32, #tpu.memory_space<vmem>>, vector<1x32xf32>
    %c0_9 = arith.constant 0 : index
    %c0_10 = arith.constant 0 : index
    %9 = vector.load %arg9[%c0_9, %c0_10] : memref<1x32xf32, #tpu.memory_space<vmem>>, vector<1x32xf32>
    %c0_11 = arith.constant 0 : index
    %c0_12 = arith.constant 0 : index
    %c0_13 = arith.constant 0 : index
    %10 = vector.load %arg10[%c0_11, %c0_12, %c0_13] : memref<1x8x32xf32, #tpu.memory_space<vmem>>, vector<1x8x32xf32>
    %11 = vector.shape_cast %10 : vector<1x8x32xf32> to vector<8x32xf32>
    %cst = arith.constant dense<0.000000e+00> : vector<8x32xf32>
    %12 = tpu.matmul %6, %7, %cst {dimension_numbers = #tpu.dot_dimension_numbers<[1], [0], [0], [1], [0, 0, 1, 1], [], []>} : vector<8x16xf32>, vector<16x32xf32>, vector<8x32xf32> -> vector<8x32xf32>
    %13 = vector.broadcast %9 : vector<1x32xf32> to vector<8x32xf32>
    %14 = arith.mulf %11, %13 : vector<8x32xf32>
    %15 = vector.broadcast %8 : vector<1x32xf32> to vector<8x32xf32>
    %16 = arith.addf %14, %15 : vector<8x32xf32>
    %17 = arith.addf %12, %16 : vector<8x32xf32>
    %18 = math.tanh %17 : vector<8x32xf32>
    %c0_14 = arith.constant 0 : index
    %c0_15 = arith.constant 0 : index
    %19 = vector.load %arg11[%c0_14, %c0_15] : memref<1x32xf32, #tpu.memory_space<vmem>>, vector<1x32xf32>
    %c0_16 = arith.constant 0 : index
    %c0_17 = arith.constant 0 : index
    %c0_18 = arith.constant 0 : index
    %20 = vector.load %arg12[%c0_16, %c0_17, %c0_18] : memref<1x8x32xf32, #tpu.memory_space<vmem>>, vector<1x8x32xf32>
    %21 = vector.shape_cast %20 : vector<1x8x32xf32> to vector<8x32xf32>
    %22 = vector.broadcast %19 : vector<1x32xf32> to vector<8x32xf32>
    %23 = arith.mulf %21, %22 : vector<8x32xf32>
    %24 = arith.addf %18, %23 : vector<8x32xf32>
    %c0_19 = arith.constant 0 : index
    %c0_20 = arith.constant 0 : index
    %25 = vector.load %arg13[%c0_19, %c0_20] : memref<32x32xf32, #tpu.memory_space<vmem>>, vector<32x32xf32>
    %c0_21 = arith.constant 0 : index
    %c0_22 = arith.constant 0 : index
    %26 = vector.load %arg14[%c0_21, %c0_22] : memref<1x32xf32, #tpu.memory_space<vmem>>, vector<1x32xf32>
    %c0_23 = arith.constant 0 : index
    %c0_24 = arith.constant 0 : index
    %27 = vector.load %arg15[%c0_23, %c0_24] : memref<1x32xf32, #tpu.memory_space<vmem>>, vector<1x32xf32>
    %c0_25 = arith.constant 0 : index
    %c0_26 = arith.constant 0 : index
    %c0_27 = arith.constant 0 : index
    %28 = vector.load %arg16[%c0_25, %c0_26, %c0_27] : memref<1x8x32xf32, #tpu.memory_space<vmem>>, vector<1x8x32xf32>
    %29 = vector.shape_cast %28 : vector<1x8x32xf32> to vector<8x32xf32>
    %cst_28 = arith.constant dense<0.000000e+00> : vector<8x32xf32>
    %30 = tpu.matmul %24, %25, %cst_28 {dimension_numbers = #tpu.dot_dimension_numbers<[1], [0], [0], [1], [0, 0, 1, 1], [], []>} : vector<8x32xf32>, vector<32x32xf32>, vector<8x32xf32> -> vector<8x32xf32>
    %31 = vector.broadcast %27 : vector<1x32xf32> to vector<8x32xf32>
    %32 = arith.mulf %29, %31 : vector<8x32xf32>
    %33 = vector.broadcast %26 : vector<1x32xf32> to vector<8x32xf32>
    %34 = arith.addf %32, %33 : vector<8x32xf32>
    %35 = arith.addf %30, %34 : vector<8x32xf32>
    %36 = math.tanh %35 : vector<8x32xf32>
    %c0_29 = arith.constant 0 : index
    %c0_30 = arith.constant 0 : index
    %37 = vector.load %arg17[%c0_29, %c0_30] : memref<1x32xf32, #tpu.memory_space<vmem>>, vector<1x32xf32>
    %c0_31 = arith.constant 0 : index
    %c0_32 = arith.constant 0 : index
    %c0_33 = arith.constant 0 : index
    %38 = vector.load %arg18[%c0_31, %c0_32, %c0_33] : memref<1x8x32xf32, #tpu.memory_space<vmem>>, vector<1x8x32xf32>
    %39 = vector.shape_cast %38 : vector<1x8x32xf32> to vector<8x32xf32>
    %40 = vector.broadcast %37 : vector<1x32xf32> to vector<8x32xf32>
    %41 = arith.mulf %39, %40 : vector<8x32xf32>
    %42 = arith.addf %36, %41 : vector<8x32xf32>
    %c0_34 = arith.constant 0 : index
    %c0_35 = arith.constant 0 : index
    %43 = vector.load %arg19[%c0_34, %c0_35] : memref<32x8xf32, #tpu.memory_space<vmem>>, vector<32x8xf32>
    %c0_36 = arith.constant 0 : index
    %c0_37 = arith.constant 0 : index
    %44 = vector.load %arg20[%c0_36, %c0_37] : memref<1x8xf32, #tpu.memory_space<vmem>>, vector<1x8xf32>
    %c0_38 = arith.constant 0 : index
    %c0_39 = arith.constant 0 : index
    %45 = vector.load %arg21[%c0_38, %c0_39] : memref<1x8xf32, #tpu.memory_space<vmem>>, vector<1x8xf32>
    %c0_40 = arith.constant 0 : index
    %c0_41 = arith.constant 0 : index
    %c0_42 = arith.constant 0 : index
    %46 = vector.load %arg22[%c0_40, %c0_41, %c0_42] : memref<1x8x8xf32, #tpu.memory_space<vmem>>, vector<1x8x8xf32>
    %47 = vector.shape_cast %46 : vector<1x8x8xf32> to vector<8x8xf32>
    %cst_43 = arith.constant dense<0.000000e+00> : vector<8x8xf32>
    %48 = tpu.matmul %42, %43, %cst_43 {dimension_numbers = #tpu.dot_dimension_numbers<[1], [0], [0], [1], [0, 0, 1, 1], [], []>} : vector<8x32xf32>, vector<32x8xf32>, vector<8x8xf32> -> vector<8x8xf32>
    %49 = vector.broadcast %45 : vector<1x8xf32> to vector<8x8xf32>
    %50 = arith.mulf %47, %49 : vector<8x8xf32>
    %51 = vector.broadcast %44 : vector<1x8xf32> to vector<8x8xf32>
    %52 = arith.addf %50, %51 : vector<8x8xf32>
    %53 = arith.addf %48, %52 : vector<8x8xf32>
    %c0_44 = arith.constant 0 : index
    %c0_45 = arith.constant 0 : index
    %54 = vector.load %arg6[%c0_44, %c0_45] : memref<1x8xf32, #tpu.memory_space<vmem>>, vector<1x8xf32>
    %55 = vector.broadcast %54 : vector<1x8xf32> to vector<8x8xf32>
    %56 = arith.mulf %53, %55 : vector<8x8xf32>
    %c0_46 = arith.constant 0 : index
    %c0_47 = arith.constant 0 : index
    %57 = vector.load %arg5[%c0_46, %c0_47] : memref<1x8xf32, #tpu.memory_space<vmem>>, vector<1x8xf32>
    %58 = vector.broadcast %57 : vector<1x8xf32> to vector<8x8xf32>
    %59 = arith.addf %56, %58 : vector<8x8xf32>
    %c0_48 = arith.constant 0 : index
    %c0_49 = arith.constant 0 : index
    %c0_50 = arith.constant 0 : index
    %60 = vector.load %arg23[%c0_48, %c0_49, %c0_50] : memref<1x8x8xf32, #tpu.memory_space<vmem>>, vector<1x8x8xf32>
    %61 = vector.shape_cast %60 : vector<1x8x8xf32> to vector<8x8xf32>
    %62 = vector.shape_cast %59 : vector<8x8xf32> to vector<1x8x8xf32>
    tpu.vector_store %arg23[%c0_48, %c0_49, %c0_50], %62 {strides = array<i32>} : memref<1x8x8xf32, #tpu.memory_space<vmem>>, vector<1x8x8xf32>,
    return
  }
  func.func @transform_0(%arg0: i32, %arg1: i32) -> (i32, i32) {
    %c0_i32 = arith.constant 0 : i32
    %c0_i32_0 = arith.constant 0 : i32
    return %arg1, %c0_i32 : i32, i32
  }
  func.func @transform_1(%arg0: i32, %arg1: i32) -> (i32, i32) {
    %c0_i32 = arith.constant 0 : i32
    %c0_i32_0 = arith.constant 0 : i32
    %c0_i32_1 = arith.constant 0 : i32
    return %c0_i32, %c0_i32_0 : i32, i32
  }
  func.func @transform_2(%arg0: i32, %arg1: i32) -> (i32, i32) {
    %c0_i32 = arith.constant 0 : i32
    %c0_i32_0 = arith.constant 0 : i32
    %c0_i32_1 = arith.constant 0 : i32
    return %c0_i32, %c0_i32_0 : i32, i32
  }
  func.func @transform_3(%arg0: i32, %arg1: i32) -> (i32, i32) {
    %c0_i32 = arith.constant 0 : i32
    %c0_i32_0 = arith.constant 0 : i32
    %c0_i32_1 = arith.constant 0 : i32
    return %c0_i32, %c0_i32_0 : i32, i32
  }
  func.func @transform_4(%arg0: i32, %arg1: i32) -> (i32, i32) {
    %c0_i32 = arith.constant 0 : i32
    %c0_i32_0 = arith.constant 0 : i32
    %c0_i32_1 = arith.constant 0 : i32
    return %c0_i32, %c0_i32_0 : i32, i32
  }
  func.func @transform_5(%arg0: i32, %arg1: i32) -> (i32, i32) {
    %c0_i32 = arith.constant 0 : i32
    %c0_i32_0 = arith.constant 0 : i32
    %c0_i32_1 = arith.constant 0 : i32
    return %c0_i32, %c0_i32_0 : i32, i32
  }
  func.func @transform_6(%arg0: i32, %arg1: i32) -> (i32, i32) {
    %c0_i32 = arith.constant 0 : i32
    %c0_i32_0 = arith.constant 0 : i32
    %c0_i32_1 = arith.constant 0 : i32
    return %c0_i32, %c0_i32_0 : i32, i32
  }
  func.func @transform_7(%arg0: i32, %arg1: i32) -> (i32, i32) {
    %c0_i32 = arith.constant 0 : i32
    %c0_i32_0 = arith.constant 0 : i32
    %c0_i32_1 = arith.constant 0 : i32
    return %c0_i32, %c0_i32_0 : i32, i32
  }
  func.func @transform_8(%arg0: i32, %arg1: i32) -> (i32, i32, i32) {
    %c0_i32 = arith.constant 0 : i32
    %c0_i32_0 = arith.constant 0 : i32
    return %arg0, %arg1, %c0_i32 : i32, i32, i32
  }
  func.func @transform_9(%arg0: i32, %arg1: i32) -> (i32, i32) {
    %c0_i32 = arith.constant 0 : i32
    %c0_i32_0 = arith.constant 0 : i32
    %c0_i32_1 = arith.constant 0 : i32
    return %c0_i32, %c0_i32_0 : i32, i32
  }
  func.func @transform_10(%arg0: i32, %arg1: i32) -> (i32, i32, i32) {
    %c0_i32 = arith.constant 0 : i32
    %c0_i32_0 = arith.constant 0 : i32
    return %arg0, %arg1, %c0_i32 : i32, i32, i32
  }
  func.func @transform_11(%arg0: i32, %arg1: i32) -> (i32, i32) {
    %c0_i32 = arith.constant 0 : i32
    %c0_i32_0 = arith.constant 0 : i32
    %c0_i32_1 = arith.constant 0 : i32
    return %c0_i32, %c0_i32_0 : i32, i32
  }
  func.func @transform_12(%arg0: i32, %arg1: i32) -> (i32, i32) {
    %c0_i32 = arith.constant 0 : i32
    %c0_i32_0 = arith.constant 0 : i32
    %c0_i32_1 = arith.constant 0 : i32
    return %c0_i32, %c0_i32_0 : i32, i32
  }
  func.func @transform_13(%arg0: i32, %arg1: i32) -> (i32, i32) {
    %c0_i32 = arith.constant 0 : i32
    %c0_i32_0 = arith.constant 0 : i32
    %c0_i32_1 = arith.constant 0 : i32
    return %c0_i32, %c0_i32_0 : i32, i32
  }
  func.func @transform_14(%arg0: i32, %arg1: i32) -> (i32, i32, i32) {
    %c0_i32 = arith.constant 0 : i32
    %c0_i32_0 = arith.constant 0 : i32
    return %arg0, %arg1, %c0_i32 : i32, i32, i32
  }
  func.func @transform_15(%arg0: i32, %arg1: i32) -> (i32, i32) {
    %c0_i32 = arith.constant 0 : i32
    %c0_i32_0 = arith.constant 0 : i32
    %c0_i32_1 = arith.constant 0 : i32
    return %c0_i32, %c0_i32_0 : i32, i32
  }
  func.func @transform_16(%arg0: i32, %arg1: i32) -> (i32, i32, i32) {
    %c0_i32 = arith.constant 0 : i32
    %c0_i32_0 = arith.constant 0 : i32
    return %arg0, %arg1, %c0_i32 : i32, i32, i32
  }
  func.func @transform_17(%arg0: i32, %arg1: i32) -> (i32, i32) {
    %c0_i32 = arith.constant 0 : i32
    %c0_i32_0 = arith.constant 0 : i32
    %c0_i32_1 = arith.constant 0 : i32
    return %c0_i32, %c0_i32_0 : i32, i32
  }
  func.func @transform_18(%arg0: i32, %arg1: i32) -> (i32, i32) {
    %c0_i32 = arith.constant 0 : i32
    %c0_i32_0 = arith.constant 0 : i32
    %c0_i32_1 = arith.constant 0 : i32
    return %c0_i32, %c0_i32_0 : i32, i32
  }
  func.func @transform_19(%arg0: i32, %arg1: i32) -> (i32, i32) {
    %c0_i32 = arith.constant 0 : i32
    %c0_i32_0 = arith.constant 0 : i32
    %c0_i32_1 = arith.constant 0 : i32
    return %c0_i32, %c0_i32_0 : i32, i32
  }
  func.func @transform_20(%arg0: i32, %arg1: i32) -> (i32, i32, i32) {
    %c0_i32 = arith.constant 0 : i32
    %c0_i32_0 = arith.constant 0 : i32
    return %arg0, %arg1, %c0_i32 : i32, i32, i32
  }
  func.func @transform_21(%arg0: i32, %arg1: i32) -> (i32, i32, i32) {
    %c0_i32 = arith.constant 0 : i32
    %c0_i32_0 = arith.constant 0 : i32
    return %arg0, %arg1, %c0_i32 : i32, i32, i32
  }
}

</mosaic_0001>

<bundles_post_ra>
// kernel: tpu_custom_call.1
= control target key start
LH: loop header
LB: loop body
LE: loop exit
PB: predicated region body
PF: predicated region fallthrough
CT: control target
= control target key end

     0   :  { %s3177_s0 = inlined_call_operand.hbm [shape: f32[8,16], index: 0, kind: input, shape index: {}]   ;;  %s3178_s1 = inlined_call_operand.hbm [shape: f32[1,16], index: 1, kind: input, shape index: {}]   ;;  %s3179_s2 = inlined_call_operand.hbm [shape: f32[1,16], index: 2, kind: input, shape index: {}]   ;;  %s3180_s3 = inlined_call_operand.hbm [shape: f32[1,8], index: 3, kind: input, shape index: {}]   ;;  %s3181_s4 = inlined_call_operand.hbm [shape: f32[1,8], index: 4, kind: input, shape index: {}]   ;;  %s3182_s5 = inlined_call_operand.hbm [shape: f32[16,32], index: 5, kind: input, shape index: {}]   ;;  %s3183_s6 = inlined_call_operand.hbm [shape: f32[1,32], index: 6, kind: input, shape index: {}]   ;;  %s3184_s7 = inlined_call_operand.hbm [shape: f32[1,32], index: 7, kind: input, shape index: {}]   ;;  %s3185_s8 = inlined_call_operand.vmem [shape: f32[4,8,32], index: 8, kind: input, shape index: {}]   ;;  %s3186_s9 = inlined_call_operand.hbm [shape: f32[1,32], index: 9, kind: input, shape index: {}]   ;;  %s3187_s10 = inlined_call_operand.vmem [shape: f32[4,8,32], index: 10, kind: input, shape index: {}]   ;;  %s3188_s11 = inlined_call_operand.hbm [shape: f32[32,32], index: 11, kind: input, shape index: {}]   ;;  %s3189_s12 = inlined_call_operand.hbm [shape: f32[1,32], index: 12, kind: input, shape index: {}]   ;;  %s3190_s13 = inlined_call_operand.hbm [shape: f32[1,32], index: 13, kind: input, shape index: {}]   ;;  %s3191_s14 = inlined_call_operand.hbm [shape: f32[4,8,32], index: 14, kind: input, shape index: {}]   ;;  %s3192_s15 = inlined_call_operand.hbm [shape: f32[1,32], index: 15, kind: input, shape index: {}]   ;;  %s3193_s16 = inlined_call_operand.vmem [shape: f32[4,8,32], index: 16, kind: input, shape index: {}]   ;;  %s3194_s17 = inlined_call_operand.vmem [shape: f32[32,8], index: 17, kind: input, shape index: {}]   ;;  %s3195_s18 = inlined_call_operand.vmem [shape: f32[1,8], index: 18, kind: input, shape index: {}]   ;;  %s3196_s19 = inlined_call_operand.vmem [shape: f32[1,8], index: 19, kind: input, shape index: {}]   ;;  %s3197_s20 = inlined_call_operand.hbm [shape: f32[4,8,8], index: 20, kind: input, shape index: {}]   ;;  %s3198_s21 = inlined_call_operand.hbm [shape: f32[4,8,8], index: 21, kind: output, shape index: {}]  }
   0x1   :  { %3229 = sst [smem:[#allocation41_spill]] %s3177_s0 }
   0x2   :  { %3230 = sst [smem:[#allocation42_spill]] %s3178_s1 }
   0x3   :  { %3231 = sst [smem:[#allocation43_spill]] %s3179_s2 }
   0x4   :  { %3232 = sst [smem:[#allocation44_spill]] %s3180_s3 }
   0x5   :  { %3233 = sst [smem:[#allocation45_spill]] %s3181_s4 }
   0x6   :  { %3234 = sst [smem:[#allocation46_spill]] %s3182_s5 }
   0x7   :  { %3235 = sst [smem:[#allocation47_spill]] %s3183_s6 }
   0x8   :  { %3236 = sst [smem:[#allocation48_spill]] %s3184_s7 }
   0x9   :  { %3237 = sst [smem:[#allocation49_spill]] %s3185_s8 }
   0xa   :  { %3238 = sst [smem:[#allocation50_spill]] %s3186_s9 }
   0xb   :  { %3239 = sst [smem:[#allocation51_spill]] %s3187_s10 }
   0xc   :  { %3240 = sst [smem:[#allocation52_spill]] %s3188_s11 }
   0xd   :  { %3241 = sst [smem:[#allocation53_spill]] %s3189_s12 }
   0xe   :  { %3242 = sst [smem:[#allocation54_spill]] %s3190_s13 }
   0xf   :  { %3243 = sst [smem:[#allocation55_spill]] %s3191_s14 }
  0x10   :  { %3244 = sst [smem:[#allocation56_spill]] %s3192_s15 }
  0x11   :  { %3245 = sst [smem:[#allocation57_spill]] %s3193_s16 }
  0x12   :  { %3246 = sst [smem:[#allocation58_spill]] %s3194_s17 }
  0x13   :  { %3247 = sst [smem:[#allocation59_spill]] %s3195_s18 }
  0x14   :  { %3248 = sst [smem:[#allocation60_spill]] %s3196_s19 }
  0x15   :  { %3249 = sst [smem:[#allocation61_spill]] %s3197_s20 }
  0x16   :  { %3250 = sst [smem:[#allocation62_spill]] %s3198_s21 }
  0x17   :  { %26 = vsyncpa [#allocation3], 0 }
  0x18   :  { %27 = vsyncpa [#allocation6], 0 }
  0x19   :  { %28 = vsyncpa [#allocation9], 0 }
  0x1a   :  { %29 = vsyncpa [#allocation12], 0 }
  0x1b   :  { %30 = vsyncpa [#allocation15], 0 }
  0x1c   :  { %31 = vsyncpa [#allocation18], 0 }
  0x1d   :  { %32 = vsyncpa [#allocation21], 0 }
  0x1e   :  { %33 = vsyncpa [#allocation4], 0 }
  0x1f   :  { %35 = vsyncpa [#allocation4 + $0x1], 0  ;;  %s2605_s2 = smov 0   ;;  %s2607_s25 = smov 0  }
  0x20   :  { %s2609_s26 = smov 0   ;;  %s2611_s27 = smov 0  }
  0x21   :  { %s2613_s3 = smov 0   ;;  %s2615_s28 = smov 0  }
  0x22 LB: > { %3251 = sst [smem:[#allocation37_spill]] %s2464_s27  ;;  %s2636_s29 = sadd.s32 4294967295, %s2472_s28   ;;  %s2472_s28 = sphi %s2615_s28, %s41_s28   ;;  %s2468_s3 = sphi %s2613_s3, %s3319_s3   ;;  %s2464_s27 = sphi %s2611_s27, %s3318_s27   ;;  %s2460_s26 = sphi %s2609_s26, %s3317_s26   ;;  %s2456_s25 = sphi %s2607_s25, %s3316_s25   ;;  %s2452_s2 = sphi %s2605_s2, %s3315_s2  }
  0x23   : > { %p1608_p0 = scmp.ge.s32.totalorder %s2472_s28, 1  ;;  %p3207_p1 = scmp.eq.s32.totalorder %s2636_s29, 0 }
  0x24   : > { %p567_p2 = scmp.lt.s32.totalorder %s2472_s28, 5  ;;  %s2474_s4 = smov [#allocation2]  }
  0x25   : > { %s582_s30 = sshll.u32 %s2474_s4, 4  ;;  %s2475_s5 = smov [#allocation5]   ;;  %s583_s30 = int_to_ptr.vmem [resolvable:$true] %s582_s30 }
  0x26   : > { %p2641_p3 = pnand %p1608_p0, %p567_p2  ;;  %s593_s22 = sshll.u32 %s2475_s5, 4  ;;  %s2653_s22 = int_to_ptr.vmem [resolvable:$true] %s593_s22 }
  0x27   : > { %s2476_s1 = smov [#allocation7]   ;;  %s3255_s4 = sld [smem:[#allocation41_spill]] }
  0x28   : > { %s3252_s0 = scalar_select %p2641_p3, 1, 0 }
  0x29   : > { %p1781_p4 = pneg %p2641_p3  ;;  %s604_s24 = sshll.u32 %s2476_s1, 4  ;;  %s2655_s24 = int_to_ptr.vmem [resolvable:$true] %s604_s24 }
  0x2a   : > { %3253 = sst [smem:[#allocation38_spill]] %s3252_s0 }
  0x2b   : > { %p2649_p5 = pnand %p1781_p4, %p3207_p1 }
  0x2d   : > { %s3254_s23 = scalar_select %p2649_p5, 1, 0 }
  0x2e   : > { %s1930_s19 = scalar_lea.hbm %s3255_s4, 128  ;;  %p2665_p7 = pneg %p2649_p5 }
  0x2f   : > { %p1931_p6 = scmp.ne.s32.totalorder %s3255_s4, %s1930_s19  ;;  %p1937_p10 = scmp.lt.u32.totalorder %s1930_s19, %s3255_s4 }
  0x31   : > { %p1933_p8 = pnand %p2665_p7, %p1931_p6 }
  0x33   : > { %p1934_p9 = pneg %p1933_p8 }
  0x35   : > { %p1939_p11 = pnand %p1937_p10, %p1934_p9 }
  0x37   : > { %1942 = shalt.err (!%p1939_p11)
}
  0x38   : > { %s1943_s18 = scalar_lea.vmem %s583_s30, 128  ;;  %p1951_p2 = scmp.lt.s32.totalorder %s583_s30, %s583_s30 }
  0x39   : > { %p1944_p12 = scmp.ne.s32.totalorder %s583_s30, %s1943_s18  ;;  %p1952_p4 = scmp.lt.s32.totalorder %s1943_s18, %s1943_s18 }
  0x3b   : > { %p1946_p13 = pnand %p1944_p12, %p2665_p7  ;;  %p1953_p1 = por %p1952_p4, %p1951_p2 }
  0x3d   : > { %p1947_p0 = pneg %p1946_p13 }
  0x3f   : > { %p1954_p3 = pnand %p1953_p1, %p1947_p0 }
  0x41   : > { %1957 = shalt.err (!%p1954_p3)
}
  0x42   : > { %1784 = dma.hbm_to_vmem [thread:$0]  (!%p2649_p5), %s3255_s4, 128, %s583_s30, [#allocation3]  }
  0x43   : > { %s3257_s21 = sld [smem:[#allocation42_spill]] }
  0x49   : > { %s1958_s1 = scalar_lea.hbm %s3257_s21, 16 }
  0x4a   : > { %p1959_p6 = scmp.ne.s32.totalorder %s3257_s21, %s1958_s1  ;;  %p1965_p1 = scmp.lt.u32.totalorder %s1958_s1, %s3257_s21 }
  0x4c   : > { %p1961_p8 = pnand %p1959_p6, %p2665_p7 }
  0x4e   : > { %p1962_p9 = pneg %p1961_p8 }
  0x50   : > { %p1967_p3 = pnand %p1965_p1, %p1962_p9 }
  0x52   : > { %1970 = shalt.err (!%p1967_p3)
}
  0x53   : > { %s1971_s30 = scalar_lea.vmem %s2653_s22, 16  ;;  %s1978_s8 = scalar_lea.vmem %s2653_s22, 32 }
  0x54   : > { %p1972_p10 = scmp.ne.s32.totalorder %s2653_s22, %s1971_s30  ;;  %p1979_p13 = scmp.lt.s32.totalorder %s2653_s22, %s2653_s22 }
  0x55   : > { %p1980_p0 = scmp.lt.s32.totalorder %s1978_s8, %s1971_s30 }
  0x56   : > { %p1974_p11 = pnand %p1972_p10, %p2665_p7 }
  0x57   : > { %p1981_p2 = por %p1980_p0, %p1979_p13 }
  0x58   : > { %p1975_p12 = pneg %p1974_p11 }
  0x5a   : > { %p1982_p4 = pnand %p1981_p2, %p1975_p12 }
  0x5c   : > { %1985 = shalt.err (!%p1982_p4)
}
  0x5d   : > { %1787 = dma.hbm_to_vmem [thread:$0]  (!%p2649_p5), %s3257_s21, 16, %s2653_s22, [#allocation6]  }
  0x5e   : > { %s3258_s10 = sld [smem:[#allocation43_spill]] }
  0x64   : > { %s1986_s19 = scalar_lea.hbm %s3258_s10, 16 }
  0x65   : > { %p1987_p6 = scmp.ne.s32.totalorder %s3258_s10, %s1986_s19  ;;  %p1993_p1 = scmp.lt.u32.totalorder %s1986_s19, %s3258_s10 }
  0x67   : > { %p1989_p8 = pnand %p1987_p6, %p2665_p7 }
  0x69   : > { %p1990_p9 = pneg %p1989_p8 }
  0x6b   : > { %p1995_p3 = pnand %p1993_p1, %p1990_p9 }
  0x6d   : > { %1998 = shalt.err (!%p1995_p3)
}
  0x6e   : > { %s1999_s22 = scalar_lea.vmem %s2655_s24, 16  ;;  %s2006_s27 = scalar_lea.vmem %s2655_s24, 32 }
  0x6f   : > { %p2000_p10 = scmp.ne.s32.totalorder %s2655_s24, %s1999_s22  ;;  %p2007_p13 = scmp.lt.s32.totalorder %s2655_s24, %s2655_s24 }
  0x70   : > { %p2008_p0 = scmp.lt.s32.totalorder %s2006_s27, %s1999_s22 }
  0x71   : > { %p2002_p11 = pnand %p2000_p10, %p2665_p7 }
  0x72   : > { %p2009_p2 = por %p2008_p0, %p2007_p13 }
  0x73   : > { %p2003_p12 = pneg %p2002_p11 }
  0x75   : > { %p2010_p4 = pnand %p2009_p2, %p2003_p12 }
  0x77   : > { %2013 = shalt.err (!%p2010_p4)
}
  0x78   : > { %1790 = dma.hbm_to_vmem [thread:$0]  (!%p2649_p5), %s3258_s10, 16, %s2655_s24, [#allocation6]  }
  0x79   : > { %s2477_s17 = smov [#allocation8]   ;;  %s2478_s1 = smov [#allocation11]  }
  0x7a   : > { %s615_s19 = sshll.u32 %s2477_s17, 4  ;;  %s636_s18 = sshll.u32 %s2478_s1, 4  ;;  %s616_s19 = int_to_ptr.vmem [resolvable:$true] %s615_s19  ;;  %s637_s18 = int_to_ptr.vmem [resolvable:$true] %s636_s18 }
  0x7b   : > { %s3259_s4 = sld [smem:[#allocation44_spill]] }
  0x81   : > { %s2014_s22 = scalar_lea.hbm %s3259_s4, 16 }
  0x82   : > { %p2015_p6 = scmp.ne.s32.totalorder %s3259_s4, %s2014_s22  ;;  %p2021_p1 = scmp.lt.u32.totalorder %s2014_s22, %s3259_s4 }
  0x84   : > { %p2017_p8 = pnand %p2015_p6, %p2665_p7 }
  0x86   : > { %p2018_p9 = pneg %p2017_p8 }
  0x88   : > { %p2023_p3 = pnand %p2021_p1, %p2018_p9 }
  0x8a   : > { %2026 = shalt.err (!%p2023_p3)
}
  0x8b   : > { %s2027_s24 = scalar_lea.vmem %s616_s19, 16  ;;  %s2034_s16 = scalar_lea.vmem %s616_s19, 32 }
  0x8c   : > { %p2028_p10 = scmp.ne.s32.totalorder %s616_s19, %s2027_s24  ;;  %p2035_p13 = scmp.lt.s32.totalorder %s616_s19, %s616_s19 }
  0x8d   : > { %p2036_p0 = scmp.lt.s32.totalorder %s2034_s16, %s2027_s24 }
  0x8e   : > { %p2030_p11 = pnand %p2028_p10, %p2665_p7 }
  0x8f   : > { %p2037_p2 = por %p2036_p0, %p2035_p13 }
  0x90   : > { %p2031_p12 = pneg %p2030_p11 }
  0x92   : > { %p2038_p4 = pnand %p2037_p2, %p2031_p12 }
  0x94   : > { %2041 = shalt.err (!%p2038_p4)
}
  0x95   : > { %1793 = dma.hbm_to_vmem [thread:$0]  (!%p2649_p5), %s3259_s4, 16, %s616_s19, [#allocation9]  }
  0x96   : > { %s3260_s30 = sld [smem:[#allocation46_spill]] }
  0x9c   : > { %s2042_s8 = scalar_lea.hbm %s3260_s30, 256 }
  0x9d   : > { %p2043_p6 = scmp.ne.s32.totalorder %s3260_s30, %s2042_s8  ;;  %p2049_p1 = scmp.lt.u32.totalorder %s2042_s8, %s3260_s30 }
  0x9f   : > { %p2045_p8 = pnand %p2043_p6, %p2665_p7 }
  0xa1   : > { %p2046_p9 = pneg %p2045_p8 }
  0xa3   : > { %p2051_p3 = pnand %p2049_p1, %p2046_p9 }
  0xa5   : > { %2054 = shalt.err (!%p2051_p3)
}
  0xa6   : > { %s2055_s16 = scalar_lea.vmem %s637_s18, 256  ;;  %p2063_p13 = scmp.lt.s32.totalorder %s637_s18, %s637_s18 }
  0xa7   : > { %p2056_p10 = scmp.ne.s32.totalorder %s637_s18, %s2055_s16  ;;  %p2064_p0 = scmp.lt.s32.totalorder %s2055_s16, %s2055_s16 }
  0xa9   : > { %p2058_p11 = pnand %p2056_p10, %p2665_p7  ;;  %p2065_p2 = por %p2064_p0, %p2063_p13 }
  0xab   : > { %p2059_p12 = pneg %p2058_p11 }
  0xad   : > { %p2066_p4 = pnand %p2065_p2, %p2059_p12 }
  0xaf   : > { %2069 = shalt.err (!%p2066_p4)
}
  0xb0   : > { %s2479_s19 = smov 128   ;;  %s2480_s21 = smov 8  }
  0xb1   : > { %1799 = dma.hbm_to_vmem [thread:$0]  (!%p2649_p5), %s3260_s30, 256, %s637_s18, [#allocation12], %s2479_s19, %s2479_s19, %s2480_s21  }
  0xb2   : > { %s2481_s1 = smov [#allocation14]   ;;  %s2482_s22 = smov [#allocation17]  }
  0xb3   : > { %s661_s8 = sshll.u32 %s2481_s1, 4  ;;  %s682_s27 = sshll.u32 %s2482_s22, 4  ;;  %s662_s8 = int_to_ptr.vmem [resolvable:$true] %s661_s8  ;;  %s683_s27 = int_to_ptr.vmem [resolvable:$true] %s682_s27 }
  0xb4   : > { %s3261_s7 = sld [smem:[#allocation48_spill]] }
  0xba   : > { %s2070_s16 = scalar_lea.hbm %s3261_s7, 16 }
  0xbb   : > { %p2071_p6 = scmp.ne.s32.totalorder %s3261_s7, %s2070_s16  ;;  %p2077_p1 = scmp.lt.u32.totalorder %s2070_s16, %s3261_s7 }
  0xbd   : > { %p2073_p8 = pnand %p2071_p6, %p2665_p7 }
  0xbf   : > { %p2074_p9 = pneg %p2073_p8 }
  0xc1   : > { %p2079_p3 = pnand %p2077_p1, %p2074_p9 }
  0xc3   : > { %2082 = shalt.err (!%p2079_p3)
}
  0xc4   : > { %s2083_s18 = scalar_lea.vmem %s662_s8, 16  ;;  %s2090_s17 = scalar_lea.vmem %s662_s8, 32 }
  0xc5   : > { %p2084_p10 = scmp.ne.s32.totalorder %s662_s8, %s2083_s18  ;;  %p2091_p13 = scmp.lt.s32.totalorder %s662_s8, %s662_s8 }
  0xc6   : > { %p2092_p0 = scmp.lt.s32.totalorder %s2090_s17, %s2083_s18 }
  0xc7   : > { %p2086_p11 = pnand %p2084_p10, %p2665_p7 }
  0xc8   : > { %p2093_p2 = por %p2092_p0, %p2091_p13 }
  0xc9   : > { %p2087_p12 = pneg %p2086_p11 }
  0xcb   : > { %p2094_p4 = pnand %p2093_p2, %p2087_p12 }
  0xcd   : > { %2097 = shalt.err (!%p2094_p4)
}
  0xce   : > { %1805 = dma.hbm_to_vmem [thread:$0]  (!%p2649_p5), %s3261_s7, 16, %s662_s8, [#allocation15]  }
  0xcf   : > { %s3262_s11 = sld [smem:[#allocation52_spill]] }
  0xd5   : > { %s2098_s15 = scalar_lea.hbm %s3262_s11, 512 }
  0xd6   : > { %p2099_p6 = scmp.ne.s32.totalorder %s3262_s11, %s2098_s15  ;;  %p2105_p1 = scmp.lt.u32.totalorder %s2098_s15, %s3262_s11 }
  0xd8   : > { %p2101_p8 = pnand %p2099_p6, %p2665_p7 }
  0xda   : > { %p2102_p9 = pneg %p2101_p8 }
  0xdc   : > { %p2107_p3 = pnand %p2105_p1, %p2102_p9 }
  0xde   : > { %2110 = shalt.err (!%p2107_p3)
}
  0xdf   : > { %s2111_s16 = scalar_lea.vmem %s683_s27, 512  ;;  %p2119_p13 = scmp.lt.s32.totalorder %s683_s27, %s683_s27 }
  0xe0   : > { %p2112_p10 = scmp.ne.s32.totalorder %s683_s27, %s2111_s16  ;;  %p2120_p0 = scmp.lt.s32.totalorder %s2111_s16, %s2111_s16 }
  0xe2   : > { %p2114_p11 = pnand %p2112_p10, %p2665_p7  ;;  %p2121_p2 = por %p2120_p0, %p2119_p13 }
  0xe4   : > { %p2115_p12 = pneg %p2114_p11 }
  0xe6   : > { %p2122_p4 = pnand %p2121_p2, %p2115_p12 }
  0xe8   : > { %2125 = shalt.err (!%p2122_p4)
}
  0xe9   : > { %1811 = dma.hbm_to_vmem [thread:$0]  (!%p2649_p5), %s3262_s11, 512, %s683_s27, [#allocation18], %s2479_s19, %s2479_s19, %s2480_s21  }
  0xea   : > { %s1607_s17 = sadd.s32 4294967294, %s2472_s28   ;;  %s53_s4 = sadd.s32 1, %s2468_s3 }
  0xeb   : > { %s375_s10 = sadd.s32 1, %s2460_s26  ;;  %p55_p6 = scmp.ge.s32.totalorder %s53_s4, 4 }
  0xec   : > { %p382_p8 = scmp.ne.s32.totalorder %s2460_s26, %s2456_s25  ;;  %p383_p9 = scmp.eq.s32.totalorder %s2472_s28, 0 }
  0xed   : > { %p388_p1 = scmp.ne.s32.totalorder %s2456_s25, %s2452_s2  ;;  %s3321_s4 = smov (%p55_p6, %s53_s4), 0 }
  0xee   : > { %3263 = sst [smem:[#allocation39_spill]] %s3321_s4  ;;  %p2817_p3 = por %p383_p9, %p382_p8 }
  0xef   : > { %p3265_p10 = scmp.eq.s32.totalorder %s2636_s29, 0  ;;  %s370_s21 = ssub.s32 %s2468_s3, %s3321_s4 }
  0xf0   : > { %p554_p12 = scmp.eq.s32.totalorder %s2636_s29, 3  ;;  %p373_p13 = scmp.eq.s32.totalorder %s370_s21, 0 }
  0xf1   : > { %p2823_p11 = por %p3265_p10, %p388_p1  ;;  %p560_p0 = scmp.eq.s32.totalorder %s1607_s17, 3 }
  0xf2   : > { %p2830_p2 = por %p554_p12, %p382_p8  ;;  %p1845_p4 = scmp.lt.s32.totalorder %s2472_s28, 4 }
  0xf3   : > { %s3266_s19 = scalar_select %p2823_p11, 1, 0 }
  0xf4   : > { %s3267_s27 = scalar_select %p2830_p2, 1, 0 }
  0xf5   : > { %s2836_s20 = scalar_select %p373_p13, %s2460_s26, %s375_s10  }
  0xf6   : > { %p2838_p6 = por %p560_p0, %p388_p1  ;;  %s758_s1 = sand.u32 1, %s2472_s28  }
  0xf7   : > { %3268 = sst [smem:[#allocation40_spill]] %s2836_s20  ;;  %s760_s22 = sand.u32 1, %s2460_s26  }
  0xf8   : > { %s3269_s15 = scalar_select %p2838_p6, 1, 0 }
  0xf9   : > { %s2844_s0 = sshll.u32 %s760_s22, 3  ;;  %s3218_s24 = sshll.u32 %s2468_s3, 7 }
  0xfa   : > { %s3270_s14 = sld [smem:[#allocation55_spill]]  ;;  %s762_s17 = scalar_lea.vmem [#allocation22], %s2844_s0 }
  0xfb   : > { %s770_s10 = sshll.u32 %s762_s17, 4  ;;  %p2857_p8 = pnand %p1845_p4, %p2817_p3  ;;  %s2861_s10 = int_to_ptr.vmem [resolvable:$true] %s770_s10 }
  0xfc   : > { %s2483_s22 = smov [#allocation10]   ;;  %s2865_s16 = scalar_lea.sflag [#allocation3], %s758_s1 }
  0xfd   : > { %s3271_s21 = scalar_select %p2857_p8, 1, 0 }
  0xfe   : > { %s2863_s7 = sshll.u32 %s2483_s22, 4  ;;  %p3224_p1 = pneg %p2857_p8  ;;  %s627_s7 = int_to_ptr.vmem [resolvable:$true] %s2863_s7 }
 0x100   : > { %s2852_s18 = scalar_lea.hbm %s3270_s14, %s3218_s24  ;;  %s2131_s24 = scalar_lea.hbm %s3270_s14, 512 }
 0x101   : > { %s2126_s8 = scalar_lea.hbm %s2852_s18, 128  ;;  %p2132_p12 = scmp.lt.u32.totalorder %s2852_s18, %s3270_s14 }
 0x102   : > { %p2127_p9 = scmp.ne.s32.totalorder %s2852_s18, %s2126_s8  ;;  %p2133_p13 = scmp.lt.u32.totalorder %s2131_s24, %s2126_s8 }
 0x103   : > { %p2135_p4 = scmp.lt.u32.totalorder %s2126_s8, %s2852_s18 }
 0x104   : > { %p2129_p10 = pnand %p3224_p1, %p2127_p9  ;;  %p2134_p0 = por %p2133_p13, %p2132_p12 }
 0x106   : > { %p2130_p3 = pneg %p2129_p10  ;;  %p2136_p6 = por %p2135_p4, %p2134_p0 }
 0x108   : > { %p2137_p2 = pnand %p2136_p6, %p2130_p3 }
 0x10a   : > { %2140 = shalt.err (!%p2137_p2)
}
 0x10b   : > { %s2141_s1 = scalar_lea.vmem %s2861_s10, 128  ;;  %s2484_s22 = smov [#allocation22]  }
 0x10c   : > { %p2142_p9 = scmp.ne.s32.totalorder %s2861_s10, %s2141_s1  ;;  %s2146_s13 = sshll.u32 %s2484_s22, 4  ;;  %s2147_s13 = int_to_ptr.vmem [resolvable:$false] %s2146_s13 }
 0x10d   : > { %s2148_s11 = scalar_lea.vmem %s2147_s13, 256  ;;  %p2149_p5 = scmp.lt.s32.totalorder %s2861_s10, %s2147_s13 }
 0x10e   : > { %p2144_p10 = pnand %p2142_p9, %p3224_p1  ;;  %p2150_p12 = scmp.lt.s32.totalorder %s2148_s11, %s2141_s1 }
 0x110   : > { %p2145_p11 = pneg %p2144_p10  ;;  %p2151_p13 = por %p2150_p12, %p2149_p5 }
 0x112   : > { %p2152_p0 = pnand %p2151_p13, %p2145_p11 }
 0x114   : > { %2155 = shalt.err (!%p2152_p0)
}
 0x115   : > { %1824 = dma.hbm_to_vmem [thread:$0]  (!%p2857_p8), %s2852_s18, 128, %s2861_s10, %s2865_s16  }
 0x116   : > { %s3272_s8 = sld [smem:[#allocation45_spill]] }
 0x11c   : > { %s2156_s17 = scalar_lea.hbm %s3272_s8, 16 }
 0x11d   : > { %p2157_p2 = scmp.ne.s32.totalorder %s3272_s8, %s2156_s17  ;;  %p2163_p6 = scmp.lt.u32.totalorder %s2156_s17, %s3272_s8 }
 0x11f   : > { %p2159_p5 = pnand %p2157_p2, %p2665_p7 }
 0x121   : > { %p2160_p11 = pneg %p2159_p5 }
 0x123   : > { %p2165_p3 = pnand %p2163_p6, %p2160_p11 }
 0x125   : > { %2168 = shalt.err (!%p2165_p3)
}
 0x126   : > { %s2169_s11 = scalar_lea.vmem %s627_s7, 16  ;;  %s2176_s18 = scalar_lea.vmem %s627_s7, 32 }
 0x127   : > { %p2170_p4 = scmp.ne.s32.totalorder %s627_s7, %s2169_s11  ;;  %p2177_p12 = scmp.lt.s32.totalorder %s627_s7, %s627_s7 }
 0x128   : > { %p2178_p13 = scmp.lt.s32.totalorder %s2176_s18, %s2169_s11 }
 0x129   : > { %p2172_p9 = pnand %p2170_p4, %p2665_p7 }
 0x12a   : > { %p2179_p0 = por %p2178_p13, %p2177_p12 }
 0x12b   : > { %p2173_p10 = pneg %p2172_p9 }
 0x12d   : > { %p2180_p1 = pnand %p2179_p0, %p2173_p10 }
 0x12f   : > { %2183 = shalt.err (!%p2180_p1)
}
 0x130   : > { %p3273_p2 = scmp.ne.s32.totalorder %s3254_s23, 0  ;;  %s2485_s30 = smov [#allocation13]  }
 0x131   : > { %s650_s24 = sshll.u32 %s2485_s30, 4  ;;  %s2486_s17 = smov [#allocation16]   ;;  %s651_s24 = int_to_ptr.vmem [resolvable:$true] %s650_s24 }
 0x132   : > { %1796 = dma.hbm_to_vmem [thread:$0]  (!%p3273_p2), %s3272_s8, 16, %s627_s7, [#allocation9]  }
 0x133   : > { %s672_s22 = sshll.u32 %s2486_s17, 4  ;;  %s3274_s6 = sld [smem:[#allocation47_spill]]  ;;  %s673_s22 = int_to_ptr.vmem [resolvable:$true] %s672_s22 }
 0x139   : > { %s2184_s4 = scalar_lea.hbm %s3274_s6, 16 }
 0x13a   : > { %p2185_p1 = scmp.ne.s32.totalorder %s3274_s6, %s2184_s4  ;;  %p2191_p6 = scmp.lt.u32.totalorder %s2184_s4, %s3274_s6 }
 0x13c   : > { %p2187_p5 = pnand %p2185_p1, %p2665_p7 }
 0x13e   : > { %p2188_p11 = pneg %p2187_p5 }
 0x140   : > { %p2193_p3 = pnand %p2191_p6, %p2188_p11 }
 0x142   : > { %2196 = shalt.err (!%p2193_p3)
}
 0x143   : > { %s2197_s7 = scalar_lea.vmem %s651_s24, 16  ;;  %s2204_s10 = scalar_lea.vmem %s651_s24, 32 }
 0x144   : > { %p2198_p4 = scmp.ne.s32.totalorder %s651_s24, %s2197_s7  ;;  %p2205_p12 = scmp.lt.s32.totalorder %s651_s24, %s651_s24 }
 0x145   : > { %p2206_p13 = scmp.lt.s32.totalorder %s2204_s10, %s2197_s7 }
 0x146   : > { %p2200_p9 = pnand %p2198_p4, %p2665_p7 }
 0x147   : > { %p2207_p0 = por %p2206_p13, %p2205_p12 }
 0x148   : > { %p2201_p10 = pneg %p2200_p9 }
 0x14a   : > { %p2208_p8 = pnand %p2207_p0, %p2201_p10 }
 0x14c   : > { %2211 = shalt.err (!%p2208_p8)
}
 0x14d   : > { %1802 = dma.hbm_to_vmem [thread:$0]  (!%p3273_p2), %s3274_s6, 16, %s651_s24, [#allocation12]  }
 0x14e   : > { %s3275_s9 = sld [smem:[#allocation50_spill]] }
 0x154   : > { %s2212_s1 = scalar_lea.hbm %s3275_s9, 16 }
 0x155   : > { %p2213_p1 = scmp.ne.s32.totalorder %s3275_s9, %s2212_s1  ;;  %p2219_p8 = scmp.lt.u32.totalorder %s2212_s1, %s3275_s9 }
 0x157   : > { %p2215_p5 = pnand %p2213_p1, %p2665_p7 }
 0x159   : > { %p2216_p11 = pneg %p2215_p5 }
 0x15b   : > { %p2221_p6 = pnand %p2219_p8, %p2216_p11 }
 0x15d   : > { %2224 = shalt.err (!%p2221_p6)
}
 0x15e   : > { %s2225_s7 = scalar_lea.vmem %s673_s22, 16  ;;  %s2232_s24 = scalar_lea.vmem %s673_s22, 32 }
 0x15f   : > { %p2226_p3 = scmp.ne.s32.totalorder %s673_s22, %s2225_s7  ;;  %p2233_p10 = scmp.lt.s32.totalorder %s673_s22, %s673_s22 }
 0x160   : > { %p2234_p12 = scmp.lt.s32.totalorder %s2232_s24, %s2225_s7 }
 0x161   : > { %p2228_p4 = pnand %p2226_p3, %p2665_p7 }
 0x162   : > { %p2235_p13 = por %p2234_p12, %p2233_p10 }
 0x163   : > { %p2229_p9 = pneg %p2228_p4 }
 0x165   : > { %p2236_p0 = pnand %p2235_p13, %p2229_p9 }
 0x167   : > { %2239 = shalt.err (!%p2236_p0)
}
 0x168   : > { %1808 = dma.hbm_to_vmem [thread:$0]  (!%p3273_p2), %s3275_s9, 16, %s673_s22, [#allocation15]  }
 0x169   : > { %s2487_s17 = smov [#allocation19]   ;;  %s2488_s20 = smov [#allocation20]  }
 0x16a   : > { %s696_s4 = sshll.u32 %s2487_s17, 4  ;;  %s707_s1 = sshll.u32 %s2488_s20, 4  ;;  %s697_s4 = int_to_ptr.vmem [resolvable:$true] %s696_s4  ;;  %s708_s1 = int_to_ptr.vmem [resolvable:$true] %s707_s1 }
 0x16b   : > { %s3276_s12 = sld [smem:[#allocation53_spill]] }
 0x171   : > { %s2240_s18 = scalar_lea.hbm %s3276_s12, 16 }
 0x172   : > { %p2241_p1 = scmp.ne.s32.totalorder %s3276_s12, %s2240_s18  ;;  %p2247_p8 = scmp.lt.u32.totalorder %s2240_s18, %s3276_s12 }
 0x174   : > { %p2243_p5 = pnand %p2241_p1, %p2665_p7 }
 0x176   : > { %p2244_p11 = pneg %p2243_p5 }
 0x178   : > { %p2249_p6 = pnand %p2247_p8, %p2244_p11 }
 0x17a   : > { %2252 = shalt.err (!%p2249_p6)
}
 0x17b   : > { %s2253_s22 = scalar_lea.vmem %s697_s4, 16  ;;  %s2260_s30 = scalar_lea.vmem %s697_s4, 32 }
 0x17c   : > { %p2254_p3 = scmp.ne.s32.totalorder %s697_s4, %s2253_s22  ;;  %p2261_p10 = scmp.lt.s32.totalorder %s697_s4, %s697_s4 }
 0x17d   : > { %p2262_p12 = scmp.lt.s32.totalorder %s2260_s30, %s2253_s22 }
 0x17e   : > { %p2256_p4 = pnand %p2254_p3, %p2665_p7 }
 0x17f   : > { %p2263_p13 = por %p2262_p12, %p2261_p10 }
 0x180   : > { %p2257_p9 = pneg %p2256_p4 }
 0x182   : > { %p2264_p0 = pnand %p2263_p13, %p2257_p9 }
 0x184   : > { %2267 = shalt.err (!%p2264_p0)
}
 0x185   : > { %1814 = dma.hbm_to_vmem [thread:$0]  (!%p3273_p2), %s3276_s12, 16, %s697_s4, [#allocation18]  }
 0x186   : > { %s3277_s18 = sld [smem:[#allocation54_spill]] }
 0x18c   : > { %s2268_s14 = scalar_lea.hbm %s3277_s18, 16 }
 0x18d   : > { %p2269_p1 = scmp.ne.s32.totalorder %s3277_s18, %s2268_s14  ;;  %p2275_p8 = scmp.lt.u32.totalorder %s2268_s14, %s3277_s18 }
 0x18f   : > { %p2271_p5 = pnand %p2269_p1, %p2665_p7 }
 0x191   : > { %p2272_p11 = pneg %p2271_p5 }
 0x193   : > { %p2277_p6 = pnand %p2275_p8, %p2272_p11 }
 0x195   : > { %2280 = shalt.err (!%p2277_p6)
}
 0x196   : > { %s2281_s30 = scalar_lea.vmem %s708_s1, 16  ;;  %s2288_s4 = scalar_lea.vmem %s708_s1, 32 }
 0x197   : > { %p2282_p3 = scmp.ne.s32.totalorder %s708_s1, %s2281_s30  ;;  %p2289_p10 = scmp.lt.s32.totalorder %s708_s1, %s708_s1 }
 0x198   : > { %p2290_p12 = scmp.lt.s32.totalorder %s2288_s4, %s2281_s30 }
 0x199   : > { %p2284_p4 = pnand %p2282_p3, %p2665_p7 }
 0x19a   : > { %p2291_p13 = por %p2290_p12, %p2289_p10 }
 0x19b   : > { %p2285_p9 = pneg %p2284_p4 }
 0x19d   : > { %p2292_p0 = pnand %p2291_p13, %p2285_p9 }
 0x19f   : > { %2295 = shalt.err (!%p2292_p0)
}
 0x1a0   : > { %1817 = dma.hbm_to_vmem [thread:$0]  (!%p3273_p2), %s3277_s18, 16, %s708_s1, [#allocation21]  }
 0x1a1   : > { %s2489_s13 = smov [#allocation23]   ;;  %s3278_s14 = sshll.u32 %s2468_s3, 7 }
 0x1a2   : > { %s718_s11 = sshll.u32 %s2489_s13, 4  ;;  %s3279_s10 = sld [smem:[#allocation61_spill]]  ;;  %s719_s11 = int_to_ptr.vmem [resolvable:$true] %s718_s11 }
 0x1a3   : > { %s3280_s6 = sld [smem:[#allocation56_spill]] }
 0x1a8   : > { %s2989_s22 = scalar_lea.hbm %s3279_s10, %s3278_s14 }
 0x1a9   : > { %s2296_s8 = scalar_lea.hbm %s3280_s6, 16 }
 0x1aa   : > { %p2297_p1 = scmp.ne.s32.totalorder %s3280_s6, %s2296_s8  ;;  %p2303_p8 = scmp.lt.u32.totalorder %s2296_s8, %s3280_s6 }
 0x1ac   : > { %p2299_p5 = pnand %p2297_p1, %p2665_p7 }
 0x1ae   : > { %p2300_p11 = pneg %p2299_p5 }
 0x1b0   : > { %p2305_p6 = pnand %p2303_p8, %p2300_p11 }
 0x1b2   : > { %2308 = shalt.err (!%p2305_p6)
}
 0x1b3   : > { %s2309_s20 = scalar_lea.vmem %s719_s11, 16  ;;  %s2316_s13 = scalar_lea.vmem %s719_s11, 32 }
 0x1b4   : > { %p2310_p3 = scmp.ne.s32.totalorder %s719_s11, %s2309_s20  ;;  %p2317_p10 = scmp.lt.s32.totalorder %s719_s11, %s719_s11 }
 0x1b5   : > { %p2318_p12 = scmp.lt.s32.totalorder %s2316_s13, %s2309_s20 }
 0x1b6   : > { %p2312_p4 = pnand %p2310_p3, %p2665_p7 }
 0x1b7   : > { %p2319_p13 = por %p2318_p12, %p2317_p10 }
 0x1b8   : > { %p2313_p9 = pneg %p2312_p4 }
 0x1ba   : > { %p2320_p0 = pnand %p2319_p13, %p2313_p9 }
 0x1bc   : > { %2323 = shalt.err (!%p2320_p0)
}
 0x1bd   : > { %1820 = dma.hbm_to_vmem [thread:$0]  (!%p3273_p2), %s3280_s6, 16, %s719_s11, [#allocation6]  }
 0x1be   : > { %s791_s5 = scalar_lea.vmem [#allocation24], %s2844_s0  ;;  %s2324_s14 = scalar_lea.hbm %s2989_s22, 128 }
 0x1bf   : > { %s799_s8 = sshll.u32 %s791_s5, 4  ;;  %p2325_p7 = scmp.ne.s32.totalorder %s2989_s22, %s2324_s14  ;;  %s800_s8 = int_to_ptr.vmem [resolvable:$true] %s799_s8 }
 0x1c0   : > { %p3281_p1 = scmp.ne.s32.totalorder %s3271_s21, 0  ;;  %s2329_s24 = scalar_lea.hbm %s3279_s10, 512 }
 0x1c1   : > { %p2330_p6 = scmp.lt.u32.totalorder %s2989_s22, %s3279_s10  ;;  %p2331_p3 = scmp.lt.u32.totalorder %s2329_s24, %s2324_s14 }
 0x1c2   : > { %p3282_p5 = pneg %p3281_p1  ;;  %p2333_p2 = scmp.lt.u32.totalorder %s2324_s14, %s2989_s22 }
 0x1c3   : > { %p2332_p4 = por %p2331_p3, %p2330_p6 }
 0x1c4   : > { %p2327_p11 = pnand %p2325_p7, %p3282_p5 }
 0x1c5   : > { %p2334_p9 = por %p2333_p2, %p2332_p4 }
 0x1c6   : > { %p2328_p8 = pneg %p2327_p11 }
 0x1c8   : > { %p2335_p10 = pnand %p2334_p9, %p2328_p8 }
 0x1ca   : > { %2338 = shalt.err (!%p2335_p10)
}
 0x1cb   : > { %s2339_s0 = scalar_lea.vmem %s800_s8, 128  ;;  %p3283_p13 = pmov %p3282_p5 }
 0x1cc   : > { %p2340_p12 = scmp.ne.s32.totalorder %s800_s8, %s2339_s0  ;;  %s2490_s11 = smov [#allocation24]  }
 0x1cd   : > { %s2344_s1 = sshll.u32 %s2490_s11, 4  ;;  %s2345_s1 = int_to_ptr.vmem [resolvable:$false] %s2344_s1 }
 0x1ce   : > { %p2342_p0 = pnand %p2340_p12, %p3283_p13  ;;  %s2346_s17 = scalar_lea.vmem %s2345_s1, 256 }
 0x1cf   : > { %p2347_p5 = scmp.lt.s32.totalorder %s800_s8, %s2345_s1  ;;  %p2348_p11 = scmp.lt.s32.totalorder %s2346_s17, %s2339_s0 }
 0x1d0   : > { %p2343_p7 = pneg %p2342_p0 }
 0x1d1   : > { %p2349_p3 = por %p2348_p11, %p2347_p5 }
 0x1d3   : > { %p2350_p6 = pnand %p2349_p3, %p2343_p7 }
 0x1d5   : > { %2353 = shalt.err (!%p2350_p6)
}
 0x1d6   : > { %1827 = dma.hbm_to_vmem [thread:$0]  (!%p3281_p1), %s2989_s22, 128, %s800_s8, %s2865_s16  }
 0x1d7   : > { %s3284_s20 = sld [smem:[#allocation38_spill]] }
 0x1dd   : > { %p3285_p8 = scmp.ne.s32.totalorder %s3284_s20, 0 }
 0x1de   : > { %p3286_p4 = scmp.eq.s32.totalorder (!%p3285_p8), %s2636_s29, 0 }
 0x1df   : > { %808 = sbr.rel (%p3285_p8) target bundleno = 1208 (0x4b8), region = 104 }
 0x1e6   : > { %2407 = dma.done.wait (%p3286_p4), [#allocation3], 128   ;;  %p3287_p2 = pmov %p3286_p4 }
 0x1e8   : > { %2409 = vsyncadd (%p3287_p2), [#allocation3], 4294967168  ;;  %p3288_p9 = pmov %p3287_p2 }
 0x1e9   : > { %p3289_p10 = pmov %p3287_p2 }
 0x1ea   : > { %2411 = dma.done.wait (%p3288_p9), [#allocation6], 32  }
 0x1eb   : > { %2413 = vsyncadd (%p3289_p10), [#allocation6], 4294967264  ;;  %p3290_p12 = pmov %p3287_p2 }
 0x1ec   : > { %p3291_p1 = pmov %p3287_p2 }
 0x1ed   : > { %2415 = dma.done.wait (%p3290_p12), [#allocation9], 32  }
 0x1ee   : > { %2417 = vsyncadd (%p3291_p1), [#allocation9], 4294967264  ;;  %p3292_p13 = pmov %p3291_p1 }
 0x1ef   : > { %p3293_p0 = pmov %p3291_p1 }
 0x1f0   : > { %2419 = dma.done.wait (%p3292_p13), [#allocation12], 272  }
 0x1f1   : > { %2421 = vsyncadd (%p3293_p0), [#allocation12], 4294967024  ;;  %p3294_p7 = pmov %p3293_p0 }
 0x1f2   : > { %p3295_p5 = pmov %p3293_p0 }
 0x1f3   : > { %2423 = dma.done.wait (%p3294_p7), [#allocation15], 32  }
 0x1f4   : > { %2425 = vsyncadd (%p3295_p5), [#allocation15], 4294967264  ;;  %p3296_p11 = pmov %p3293_p0 }
 0x1f5   : > { %p3297_p3 = pmov %p3293_p0 }
 0x1f6   : > { %2427 = dma.done.wait (%p3296_p11), [#allocation18], 528  }
 0x1f7   : > { %2429 = vsyncadd (%p3297_p3), [#allocation18], 4294966768  ;;  %p3298_p6 = pmov %p3293_p0 }
 0x1f8   : > { %p3299_p8 = pmov %p3293_p0 }
 0x1f9   : > { %2431 = dma.done.wait (%p3298_p6), [#allocation21], 16  }
 0x1fa   : > { %2433 = vsyncadd (%p3299_p8), [#allocation21], 4294967280  ;;  %s858_s21 = sand.u32 1, %s2636_s29   ;;  %s860_s16 = sand.u32 1, %s2456_s25  }
 0x1fb   : > { %s3064_s22 = sshll.u32 %s860_s16, 3  ;;  %s859_s13 = scalar_lea.sflag [#allocation3], %s858_s21 }
 0x1fc   : > { %s862_s9 = scalar_lea.vmem [#allocation22], %s3064_s22  ;;  %p3300_p4 = scmp.ne.s32.totalorder %s3266_s19, 0 }
 0x1fe   : > { %2435 = dma.done.wait (%p3300_p4), %s859_s13, 128  }
 0x1ff   : > { %2437 = vsyncadd (%p3300_p4), %s859_s13, 4294967168  ;;  %p3301_p2 = pmov %p3293_p0 }
 0x200   : > { %p3302_p9 = pmov %p3293_p0 }
 0x201   : > { %2439 = dma.done.wait (%p3301_p2), [#allocation6], 16  }
 0x202   : > { %2441 = vsyncadd (%p3302_p9), [#allocation6], 4294967280  ;;  %s875_s12 = scalar_lea.vmem [#allocation24], %s3064_s22 }
 0x203   : > { %2443 = dma.done.wait (%p3300_p4), %s859_s13, 128  }
 0x204   : > { %2445 = vsyncadd (%p3300_p4), %s859_s13, 4294967168  ;;  %v2491_v0 = vmov 0.0|0.0   ;;  %vm2492_vm0 = vmmov 0   ;;  %v2493_v1 = vmov 0.0   ;;  %v998_v2 = vld [vmem:[#allocation11] sm:$0xff]  ;;  %v999_v3 = vld [vmem:[#allocation11 + $0x8] sm:$0xff] }
 0x205   : > { %1708 = vmatprep.subr.bf16.mxu0 %v2491_v0  ;;  %1683 = vmatprep.mubr.msk.f32.mxu0 %vm2492_vm0, %v2493_v1  ;;  %v981_v4 = vld [vmem:[#allocation2] sm:$0xff]  ;;  %v1709_v5 = vpack.c.bf16 %v999_v3, %v998_v2  ;;  %v1647_v6 = vld [vmem:[#allocation5] ss:$0 sm:$0xff]  ;;  %v1648_v7 = vld [vmem:[#allocation7] ss:$0 sm:$0xff]  ;;  %s3303_s29 = sld [smem:[#allocation37_spill]] }
 0x206   : > { %1711 = vmatprep.subr.bf16.mxu1 %v2491_v0  ;;  %1694 = vmatprep.mubr.msk.f32.mxu1 %vm2492_vm0, %v2493_v1  ;;  %v989_v8 = vsub.f32 %v981_v4, %v1647_v6  ;;  %vm1017_vm1 = vcmask 130048   ;;  %v1102_v10 = vld [vmem:[#allocation17] sm:$0xff]  ;;  %v1103_v11 = vld [vmem:[#allocation17 + $0x8] sm:$0xff]  ;;  %v1104_v12 = vld [vmem:[#allocation17 + $0x10] sm:$0xff]  ;;  %s3304_s23 = sld [smem:[#allocation49_spill]]  ;;  %s3305_s4 = sld [smem:[#allocation51_spill]] }
 0x207   : > { %1710 = vmatpush3.bf16.msra.mxu0 %v1709_v5  ;;  %v1105_v13 = vld [vmem:[#allocation17 + $0x18] sm:$0xff]  ;;  %v1712_v14 = vpack.c.bf16 %v1103_v11, %v1102_v10  ;;  %vm1123_vm2 = vcmask 261120   ;;  %s3306_s17 = sld [smem:[#allocation58_spill]]  ;;  %v1653_v35 = vld [vmem:[#allocation20] ss:$0 sm:$0xff]  ;;  %v1108_v36 = vld [vmem:[%s862_s9] sm:$0xff] }
 0x208   : > { %v997_v9 = vmul.f32 %v1648_v7, %v989_v8  ;;  %1717 = vmatprep.subr.bf16.mxu0 %v2491_v0  ;;  %v1715_v15 = vpack.c.bf16 %v1105_v13, %v1104_v12  ;;  %v1649_v16 = vld [vmem:[#allocation14] ss:$0 sm:$0xff]  ;;  %v1650_v19 = vld [vmem:[#allocation13] ss:$0 sm:$0xff]  ;;  %v1652_v24 = vld [vmem:[#allocation16] ss:$0 sm:$0xff]  ;;  %v1115_v37 = vmul.f32 %v1653_v35, %v1108_v36 }
 0x209   : > { %1713 = vmatpush3.bf16.msra.mxu1 %v1712_v14  ;;  %v1654_v38 = vld [vmem:[#allocation19] ss:$0 sm:$0xff]  ;;  %s3307_s24 = sld [smem:[#allocation57_spill]]  ;;  %v1656_v43 = vld [vmem:[#allocation23] ss:$0 sm:$0xff]  ;;  %s3309_s20 = sld [smem:[#allocation59_spill]] }
 0x20a   : > { %1684 = vmatmul.mubr.msk.f32.vlgmr.msra.gmra.mrb[0].mxu0 %vm1017_vm1, %v997_v9  ;;  %1714 = vmatprep.subr.bf16.mxu1 %v2491_v0  ;;  %v1122_v39 = vadd.f32 %v1654_v38, %v1115_v37  ;;  %v1214_v49 = vld [vmem:[%s875_s12] sm:$0xff]  ;;  %v1660_v54 = vld [vmem:[#allocation10] ss:$0 sm:$0xff]  ;;  %v1661_v57 = vld [vmem:[#allocation8] ss:$0 sm:$0xff]  ;;  %s959_s21 = scalar_lea.vmem [#allocation25], %s3064_s22 }
 0x20b   : > { %1705 = vmatprep.mubr.msk.f32.mxu0 %vm2492_vm0, %v2493_v1  ;;  %p960_p10 = scmp.lt.s32.totalorder %s3303_s29, 3  ;;  %s1335_s13 = sshll.u32 %s959_s21, 4  ;;  %vm1318_vm3 = vcmask 64512   ;;  %s3130_s13 = int_to_ptr.vmem [resolvable:$true] %s1335_s13 }
 0x20c   : > { %s3310_s8 = sld [smem:[#allocation62_spill]]  ;;  %p3311_p1 = scmp.ne.s32.totalorder %s3267_s27, 0 }
 0x20d   : > { %1716 = vmatpush3.bf16.msra.mxu1 %v1715_v15  ;;  %s961_s19 = scalar_select %p960_p10, %s3303_s29, 3  ;;  %v1208_v29 = vld [vmem:[%s3306_s17] sm:$0xff]  ;;  %v1209_v30 = vld [vmem:[%s3306_s17 + $0x8] sm:$0xff]  ;;  %v1210_v31 = vld [vmem:[%s3306_s17 + $0x10] sm:$0xff] }
 0x20e   : > { %v1718_v32 = vpack.c.bf16 %v1209_v30, %v1208_v29  ;;  %v1211_v33 = vld [vmem:[%s3306_s17 + $0x18] sm:$0xff]  ;;  %s2494_s22 = smov [#allocation25]  }
 0x20f   : > { %s3085_s5 = sshll.u32 %s961_s19, 3  ;;  %v1721_v34 = vpack.c.bf16 %v1211_v33, %v1210_v31  ;;  %v1658_v51 = vld [vmem:[%s3309_s20] ss:$0 sm:$0xff] }
 0x210   : > { %s966_s7 = scalar_lea.vmem %s3304_s23, %s3085_s5  ;;  %s973_s0 = scalar_lea.vmem %s3305_s4, %s3085_s5  ;;  %1719 = vmatpush3.bf16.msra.mxu0 %v1718_v32 }
 0x211   : > { %v1002_v17 = vld [vmem:[%s966_s7] sm:$0xff]  ;;  %1720 = vmatprep.subr.bf16.mxu0 %v2491_v0  ;;  %s980_s30 = scalar_lea.vmem %s3307_s24, %s3085_s5  ;;  %s1663_s5 = sshll.u32 %s3303_s29, 7 }
 0x212   : > { %v1009_v18 = vmul.f32 %v1649_v16, %v1002_v17  ;;  %v1093_v25 = vld [vmem:[%s973_s0] sm:$0xff]  ;;  %s3308_s0 = sld [smem:[#allocation60_spill]]  ;;  %s3128_s14 = scalar_lea.hbm %s3310_s8, %s1663_s5 }
 0x213   : > { %v1100_v26 = vmul.f32 %v1652_v24, %v1093_v25  ;;  %v1199_v44 = vld [vmem:[%s980_s30] sm:$0xff]  ;;  %s1321_s23 = scalar_lea.sflag [#allocation4], %s860_s16  ;;  %s2354_s7 = scalar_lea.vmem %s3130_s13, 128 }
 0x214   : > { %v1016_v20 = vadd.f32 %v1650_v19, %v1009_v18  ;;  %1722 = vmatpush3.bf16.msra.mxu0 %v1721_v34  ;;  %v1206_v45 = vmul.f32 %v1656_v43, %v1199_v44  ;;  %p2355_p12 = scmp.ne.s32.totalorder %s3130_s13, %s2354_s7  ;;  %s2358_s29 = sshll.u32 %s2494_s22, 4  ;;  %s2359_s29 = int_to_ptr.vmem [resolvable:$false] %s2358_s29 }
 0x215   : > { %s2360_s24 = scalar_lea.vmem %s2359_s29, 256  ;;  %p2361_p7 = scmp.lt.s32.totalorder %s3130_s13, %s2359_s29 }
 0x216   : > { %p2356_p13 = pnand %p2355_p12, %p3311_p1  ;;  %p2362_p5 = scmp.lt.s32.totalorder %s2360_s24, %s2354_s7 }
 0x218   : > { %v1657_v48 = vld [vmem:[%s3308_s0] ss:$0 sm:$0xff]  ;;  %p2357_p0 = pneg %p2356_p13  ;;  %p2363_p11 = por %p2362_p5, %p2361_p7 }
 0x219   : > { %v1221_v50 = vmul.f32 %v1657_v48, %v1214_v49 }
 0x21a   : > { %p2364_p3 = pnand %p2363_p11, %p2357_p0 }
 0x21b   : > { %v1228_v52 = vadd.f32 %v1658_v51, %v1221_v50 }
 0x2dd   : > { %v1087_v21 = vpop.f32.mrb[0].mxu0 }
 0x2de   : > { %v1088_v22 = vadd.f32 %v1087_v21, %v1016_v20  ;;  %v1685_v23 = vpop.f32.mrb[1].mxu0 }
 0x2e0   : > { %1926 = vtanh.f32 %v1088_v22 }
 0x2ea   : > { %v1927_v27 = vpop.eup %1926 }
 0x2eb   : > { %v1101_v28 = vadd.f32 %v1927_v27, %v1100_v26 }
 0x2ed   : > { %1695 = vmatmul.mubr.msk.f32.vlgmr.msra.gmra.mrb[0].mxu1 %vm1123_vm2, %v1101_v28 }
 0x3c0   : > { %v1193_v40 = vpop.f32.mrb[0].mxu1 }
 0x3c1   : > { %v1194_v41 = vadd.f32 %v1193_v40, %v1122_v39  ;;  %v1696_v42 = vpop.f32.mrb[1].mxu1 }
 0x3c3   : > { %1928 = vtanh.f32 %v1194_v41 }
 0x3cd   : > { %v1929_v46 = vpop.eup %1928 }
 0x3ce   : > { %v1207_v47 = vadd.f32 %v1929_v46, %v1206_v45 }
 0x3d0   : > { %1706 = vmatmul.mubr.msk.f32.vlgmr.msra.gmra.mrb[2].mxu0 %vm1123_vm2, %v1207_v47 }
 0x4a3   : > { %v1298_v53 = vpop.f32.mrb[2].mxu0 }
 0x4a4   : > { %v1299_v55 = vadd.f32 %v1298_v53, %v1228_v52  ;;  %v1707_v56 = vpop.f32.mrb[3].mxu0 }
 0x4a6   : > { %v1309_v58 = vmul.f32 %v1660_v54, %v1299_v55 }
 0x4a8   : > { %v1317_v59 = vadd.f32 %v1661_v57, %v1309_v58 }
 0x4aa   : > { %1319 = vst.msk [vmem:[%s959_s21] sm:$0xff] %vm1318_vm3, %v1317_v59 }
 0x4ab   : > { %2367 = shalt.err (!%p2364_p3)
}
 0x4ac   : > { %s2368_s16 = scalar_lea.hbm %s3128_s14, 128  ;;  %s2372_s4 = scalar_lea.hbm %s3310_s8, 512 }
 0x4ad   : > { %p2369_p6 = scmp.ne.s32.totalorder %s3128_s14, %s2368_s16  ;;  %p2373_p2 = scmp.lt.u32.totalorder %s3128_s14, %s3310_s8 }
 0x4ae   : > { %p2374_p9 = scmp.lt.u32.totalorder %s2372_s4, %s2368_s16  ;;  %p2376_p12 = scmp.lt.u32.totalorder %s2368_s16, %s3128_s14 }
 0x4af   : > { %p2370_p8 = pnand %p2369_p6, %p3311_p1 }
 0x4b0   : > { %p2375_p10 = por %p2374_p9, %p2373_p2 }
 0x4b1   : > { %p2371_p4 = pneg %p2370_p8 }
 0x4b2   : > { %p2377_p13 = por %p2376_p12, %p2375_p10 }
 0x4b4   : > { %p2378_p0 = pnand %p2377_p13, %p2371_p4 }
 0x4b6   : > { %2381 = shalt.err (!%p2378_p0)
}
 0x4b7   : > { %1779 = dma.vmem_to_hbm [thread:$0]  (%p3311_p1), %s3130_s13, 128, %s3128_s14, %s1321_s23  }
 0x4b8 PF: > { %p1859_p7 = scmp.ge.s32.totalorder %s2472_s28, 2  ;;  %s1347_s1 = sand.u32 1, %s2452_s2  }
 0x4b9   : > { %p3312_p5 = scmp.ne.s32.totalorder %s3269_s15, 0  ;;  %s1348_s20 = scalar_lea.sflag [#allocation4], %s1347_s1 }
 0x4bb   : > { %p1829_p11 = pnand %p1859_p7, %p3312_p5 }
 0x4bd   : > { %2447 = dma.done.wait (!%p1829_p11), %s1348_s20, 128  }
 0x4be   : > { %2449 = vsyncadd (!%p1829_p11), %s1348_s20, 4294967168  ;;  %s41_s28 = sadd.s32 1, %s2472_s28   ;;  %s3313_s27 = sld [smem:[#allocation40_spill]] }
 0x4bf   : > { %p38_p3 = scmp.ge.s32.totalorder %s41_s28, 6   ;;  %s3314_s5 = sld [smem:[#allocation39_spill]] }
 0x4c0   : > { %s3315_s2 = smov %s2456_s25  ;;  %s3316_s25 = smov %s2460_s26 }
 0x4c1   :  { %40 = sbr.rel (!%p38_p3) target bundleno = 34 (0x22), region = 221 }
 0x4c4   : > { %s3317_s26 = smov %s3313_s27  ;;  %s3318_s27 = smov %s2468_s3 }
 0x4c5   : > { %s3319_s3 = smov %s3314_s5 }
 0x4c8   :  { %1353 = vsyncpa [#allocation3], 1 }
 0x4c9   :  { %1355 = vsyncpa [#allocation3 + $0x1], 1 }
 0x4ca   :  { %1356 = vsyncpa [#allocation6], 1 }
 0x4cb   :  { %1357 = vsyncpa [#allocation9], 1 }
 0x4cc   :  { %1358 = vsyncpa [#allocation12], 1 }
 0x4cd   :  { %1359 = vsyncpa [#allocation15], 1 }
 0x4ce   :  { %1360 = vsyncpa [#allocation18], 1 }
 0x4cf   :  { %1361 = vsyncpa [#allocation21], 1 }
 0x4d0   :  { %1362 = vsyncpa [#allocation4], 1 }
 0x4d1   :  { %1364 = vsyncpa [#allocation4 + $0x1], 1 }

</bundles_post_ra>
